<compile_context>
chip_gen: v7x
topology: tpu7x:2x2x1
jax: 0.10.0
libtpu: 0.0.40
codegen_flags: <defaults>
</compile_context>

<pallas_src>
import math
import functools

import numpy as np
import jax
import jax.numpy as jnp
from jax import lax
from jax.experimental import pallas as pl
from jax.experimental.pallas import tpu as pltpu


def lgblock_kernel(x_ref, wc_ref, bc_ref, pe_ref, wa_ref, ba_ref, out_ref,
                   *, tb, s, L, c_in, c_out, d_out):
    f32 = jnp.float32
    bf16 = jnp.bfloat16

    def mm(a, b):
        # bf16 MXU matmul, f32 accumulation.
        return jnp.dot(a.astype(bf16), b, preferred_element_type=f32)

    # ---- weights / biases hoisted out of the per-sample loop (stay resident) --
    w1 = wc_ref[0:3 * c_in, :]                        # (3*Cin, Cout) bf16, BN1 folded
    ws = wc_ref[3 * c_in:4 * c_in, :]                 # (Cin,  Cout)  bf16, shortcut BN folded
    w2 = wc_ref[4 * c_in:4 * c_in + 3 * c_out, :]     # (3*Cout, Cout) bf16, BN2 folded
    wqkv = wa_ref[:, 0:3 * c_out]                     # (Cout, 3*Cout) bf16, 1/sqrt(d) in Q cols
    wo = wa_ref[:, 3 * c_out:3 * c_out + d_out]       # (Cout, Dout)  bf16
    b1 = bc_ref[0:1, :]                               # (1, Cout) f32  BN1 shift
    b2 = bc_ref[1:2, :]                               # (1, Cout) f32  BN2 + shortcut-BN shifts
    bqkv = ba_ref[:, 0:3 * c_out]                     # (1, 3*Cout) f32 (Q part pre-scaled)
    bo = ba_ref[:, 3 * c_out:3 * c_out + d_out]       # (1, Dout) f32
    pe = pe_ref[...]                                  # (L, Cout) f32

    def body(i, carry):
        # ---- TConv[0]: k=(3,1), stride=s, pad=(1,0) as 3 strided tap reads of
        #      the host-zero-padded input, fused into one matmul (BN1 folded).
        t0 = x_ref[i, pl.ds(0, L, stride=s), :]        # x_pad[t*s + 0]
        t1 = x_ref[i, pl.ds(1, L, stride=s), :]        # x_pad[t*s + 1] == x[t*s]
        t2 = x_ref[i, pl.ds(2, L, stride=s), :]        # x_pad[t*s + 2]
        x3 = jnp.concatenate([t0, t1, t2], axis=-1)    # (L, 3*Cin) f32
        y1 = jnp.maximum(mm(x3, w1) + b1, 0.0)         # conv1 + BN1 + ReLU, (L, Cout) f32

        # ---- TConv[3]: k=(3,1), stride=1, pad=(1,0) via shifted copies of y1
        #      (zero-padded at the sequence boundaries), one fused matmul.
        zero = jnp.zeros((1, c_out), f32)
        prev = jnp.concatenate([zero, y1[:L - 1, :]], axis=0)   # y1[t-1]
        nxt = jnp.concatenate([y1[1:, :], zero], axis=0)        # y1[t+1]
        y13 = jnp.concatenate([prev, y1, nxt], axis=-1)         # (L, 3*Cout)

        # ---- shortcut (1x1 stride-s conv, identity when s==1) reuses the
        #      centre tap t1; conv2-BN + shortcut-BN shifts pre-summed into b2.
        h = jnp.maximum(mm(y13, w2) + mm(t1, ws) + b2, 0.0)     # (L, Cout) f32

        # ---- PositionalEncoding (dropout = eval identity)
        h = h + pe

        # ---- single-head attention, fused QKV projection
        qkv = mm(h, wqkv) + bqkv                                # (L, 3*Cout) f32
        q = qkv[:, 0:c_out]                                     # already scaled by 1/sqrt(d)
        k = qkv[:, c_out:2 * c_out]
        v = qkv[:, 2 * c_out:3 * c_out]
        scores = lax.dot_general(q.astype(bf16), k.astype(bf16),
                                 (((1,), (1,)), ((), ())),
                                 preferred_element_type=f32)    # q @ k.T, (L, L)
        scores = scores - jnp.max(scores, axis=-1, keepdims=True)
        p = jnp.exp(scores)
        p = p * pl.reciprocal(jnp.sum(p, axis=-1, keepdims=True), approx=True)
        ctx = mm(p, v.astype(bf16))                             # (L, Cout) f32
        out = mm(ctx, wo) + bo                                  # (L, Dout) f32

        out_ref[i] = out.astype(out_ref.dtype)
        return carry

    lax.fori_loop(0, tb, body, None, unroll=True)


def _pick_batch_tile(B, cap=8):
    # Batch several samples per grid step (amortize ~0.35us/step overhead);
    # prefer an even-length grid so v7x's two TensorCores both get work.
    best = None
    for tb in range(1, min(B, cap) + 1):
        if B % tb:
            continue
        score = ((B // tb) % 2 == 0, tb)
        if best is None or score > best[0]:
            best = (score, tb)
    return best[1]


def lgblock(x_nchw, params):
    """x_nchw: (B, C_in, H, 1) float32 -> (B, output_dim, L, 1)."""
    B, Cin, H, W = x_nchw.shape
    assert W == 1, "LGBlock expects width-1 NCHW input"
    s = params["s"]
    c_out = params["bc"].shape[1]
    L = params["pe"].shape[0]
    d_out = params["ba"].shape[1] - 3 * c_out
    assert L == (H - 1) // s + 1

    # NCHW -> (B, H, Cin); apply the conv's pad=(1,0) once here (pure layout).
    x = jnp.transpose(x_nchw[..., 0], (0, 2, 1)).astype(jnp.float32)
    x_pad = jnp.pad(x, ((0, 0), (1, 1), (0, 0)))          # (B, H+2, Cin)

    tb = _pick_batch_tile(B)
    grid = (B // tb,)

    def full_spec(shape):
        return pl.BlockSpec(shape, lambda b, _n=len(shape): (0,) * _n)

    kernel = functools.partial(lgblock_kernel, tb=tb, s=s, L=L,
                               c_in=Cin, c_out=c_out, d_out=d_out)

    out = pl.pallas_call(
        kernel,
        out_shape=jax.ShapeDtypeStruct((B, L, d_out), jnp.float32),
        grid=grid,
        in_specs=[
            pl.BlockSpec((tb, H + 2, Cin), lambda b: (b, 0, 0)),  # padded input
            full_spec(params["wc"].shape),                        # conv weight slab (bf16)
            full_spec(params["bc"].shape),                        # conv bias slab (f32)
            full_spec(params["pe"].shape),                        # positional encoding
            full_spec(params["wa"].shape),                        # attn weight slab (bf16)
            full_spec(params["ba"].shape),                        # attn bias slab (f32)
        ],
        out_specs=pl.BlockSpec((tb, L, d_out), lambda b: (b, 0, 0)),
        compiler_params=pltpu.CompilerParams(dimension_semantics=("parallel",)),
    )(x_pad, params["wc"], params["bc"], params["pe"], params["wa"], params["ba"])

    # torch: transpose(1,2) then unsqueeze(3)  ->  (B, Dout, L, 1)
    return jnp.transpose(out, (0, 2, 1))[..., None]


def make_params(key, c_in, c_out, s, H, max_len, output_dim):
    """Deterministic synthetic LGBlock parameters, pre-folded & packed for the kernel."""
    ks = jax.random.split(key, 16)

    def bn_fold(k, c):
        kg, kb, km, kv = jax.random.split(k, 4)
        gamma = 1.0 + 0.1 * jax.random.normal(kg, (c,), jnp.float32)
        beta = 0.1 * jax.random.normal(kb, (c,), jnp.float32)
        mean = 0.1 * jax.random.normal(km, (c,), jnp.float32)
        var = jnp.abs(jax.random.normal(kv, (c,), jnp.float32)) + 0.5
        scale = gamma / jnp.sqrt(var + 1e-5)
        shift = beta - mean * scale
        return scale, shift

    # raw conv weights (tap-major), as in the torch module
    w1 = 0.2 * jax.random.normal(ks[0], (3, c_in, c_out), jnp.float32)
    s1, b1 = bn_fold(ks[1], c_out)
    w2 = 0.2 * jax.random.normal(ks[2], (3, c_out, c_out), jnp.float32)
    s2, b2 = bn_fold(ks[3], c_out)

    if s != 1:
        ws = 0.2 * jax.random.normal(ks[4], (c_in, c_out), jnp.float32)
        ss, bs = bn_fold(ks[5], c_out)
    else:
        assert c_in == c_out, "identity shortcut requires c_in == c_out"
        ws = jnp.eye(c_in, c_out, dtype=jnp.float32)
        ss = jnp.ones((c_out,), jnp.float32)
        bs = jnp.zeros((c_out,), jnp.float32)

    # fold eval-mode BN scales into the conv / shortcut weights
    w1f = w1 * s1[None, None, :]
    w2f = w2 * s2[None, None, :]
    wsf = ws * ss[None, :]

    L = (H - 1) // s + 1
    assert max_len >= L
    assert c_out % 2 == 0, "sinusoidal PE requires an even model dim"

    # sinusoidal positional encoding table (first L positions used)
    pos = np.arange(max_len, dtype=np.float32)[:, None]
    div = np.exp(np.arange(0, c_out, 2, dtype=np.float32)
                 * (-math.log(10000.0) / c_out))
    pe = np.zeros((max_len, c_out), np.float32)
    pe[:, 0::2] = np.sin(pos * div)
    pe[:, 1::2] = np.cos(pos * div)
    pe = jnp.asarray(pe[:L])

    wq = 0.2 * jax.random.normal(ks[6], (c_out, c_out), jnp.float32)
    bq = 0.1 * jax.random.normal(ks[7], (c_out,), jnp.float32)
    wk = 0.2 * jax.random.normal(ks[8], (c_out, c_out), jnp.float32)
    bk = 0.1 * jax.random.normal(ks[9], (c_out,), jnp.float32)
    wv = 0.2 * jax.random.normal(ks[10], (c_out, c_out), jnp.float32)
    bv = 0.1 * jax.random.normal(ks[11], (c_out,), jnp.float32)
    wo = 0.2 * jax.random.normal(ks[12], (c_out, output_dim), jnp.float32)
    bo = 0.1 * jax.random.normal(ks[13], (output_dim,), jnp.float32)

    # fold 1/sqrt(d) into the Q projection
    inv_sqrt_d = 1.0 / math.sqrt(c_out)
    wq = wq * inv_sqrt_d
    bq = bq * inv_sqrt_d

    # packed operand slabs (weights bf16 for the MXU, biases f32)
    wc = jnp.concatenate([w1f.reshape(3 * c_in, c_out),
                          wsf,
                          w2f.reshape(3 * c_out, c_out)], axis=0).astype(jnp.bfloat16)
    bc = jnp.stack([b1, b2 + bs], axis=0)                                  # (2, c_out)
    wa = jnp.concatenate([wq, wk, wv, wo], axis=1).astype(jnp.bfloat16)    # (c_out, 3*c_out+out)
    ba = jnp.concatenate([bq, bk, bv, bo], axis=0)[None, :]                # (1, 3*c_out+out)

    return {"wc": wc, "bc": bc, "pe": pe, "wa": wa, "ba": ba, "s": s}


if __name__ == "__main__":
    B, C_IN, C_OUT, S, H, MAX_LEN, OUT_DIM = 2, 4, 8, 2, 16, 16, 8

    key = jax.random.PRNGKey(0)
    kx, kp = jax.random.split(key)
    x = jax.random.normal(kx, (B, C_IN, H, 1), jnp.float32)
    params = make_params(kp, C_IN, C_OUT, S, H, MAX_LEN, OUT_DIM)

    fwd = jax.jit(functools.partial(lgblock, params=params))
    y = fwd(x)
    jax.block_until_ready(y)

    L = (H - 1) // S + 1
    assert y.shape == (B, OUT_DIM, L, 1), y.shape
    assert bool(jnp.all(jnp.isfinite(y)))
    print("KERNEL_OK")
</pallas_src>

<mosaic_0001>
module attributes {stable_mosaic.version = 11 : i64} {
  func.func @lgblock_kernel(%arg0: i32, %arg1: memref<1x18x4xf32, #tpu.memory_space<vmem>>, %arg2: memref<40x8xbf16, #tpu.memory_space<vmem>>, %arg3: memref<2x8xf32, #tpu.memory_space<vmem>>, %arg4: memref<8x8xf32, #tpu.memory_space<vmem>>, %arg5: memref<8x32xbf16, #tpu.memory_space<vmem>>, %arg6: memref<1x32xf32, #tpu.memory_space<vmem>>, %arg7: memref<1x8x8xf32, #tpu.memory_space<vmem>>) attributes {dimension_semantics = [#tpu.dimension_semantics<parallel>], iteration_bounds = array<i64: 2>, scalar_prefetch = 0 : i64, scratch_operands = 0 : i64, tpu.core_type = #tpu.core_type<tc>, window_params = [{transform_indices = @transform_0, window_bounds = array<i64: 1, 18, 4>}, {pipeline_mode = #tpu.pipeline_mode<synchronous>, transform_indices = @transform_1, window_bounds = array<i64: 40, 8>}, {pipeline_mode = #tpu.pipeline_mode<synchronous>, transform_indices = @transform_2, window_bounds = array<i64: 2, 8>}, {pipeline_mode = #tpu.pipeline_mode<synchronous>, transform_indices = @transform_3, window_bounds = array<i64: 8, 8>}, {pipeline_mode = #tpu.pipeline_mode<synchronous>, transform_indices = @transform_4, window_bounds = array<i64: 8, 32>}, {pipeline_mode = #tpu.pipeline_mode<synchronous>, transform_indices = @transform_5, window_bounds = array<i64: 1, 32>}, {transform_indices = @transform_6, window_bounds = array<i64: 1, 8, 8>}]} {
    %c0 = arith.constant 0 : index
    %c0_0 = arith.constant 0 : index
    %0 = vector.load %arg2[%c0, %c0_0] : memref<40x8xbf16, #tpu.memory_space<vmem>>, vector<12x8xbf16>
    %c12 = arith.constant 12 : index
    %c0_1 = arith.constant 0 : index
    %1 = vector.load %arg2[%c12, %c0_1] : memref<40x8xbf16, #tpu.memory_space<vmem>>, vector<4x8xbf16>
    %c16 = arith.constant 16 : index
    %c0_2 = arith.constant 0 : index
    %2 = vector.load %arg2[%c16, %c0_2] : memref<40x8xbf16, #tpu.memory_space<vmem>>, vector<24x8xbf16>
    %c0_3 = arith.constant 0 : index
    %c0_4 = arith.constant 0 : index
    %3 = vector.load %arg5[%c0_3, %c0_4] : memref<8x32xbf16, #tpu.memory_space<vmem>>, vector<8x24xbf16>
    %c0_5 = arith.constant 0 : index
    %c24 = arith.constant 24 : index
    %4 = vector.load %arg5[%c0_5, %c24] : memref<8x32xbf16, #tpu.memory_space<vmem>>, vector<8x8xbf16>
    %c0_6 = arith.constant 0 : index
    %c0_7 = arith.constant 0 : index
    %5 = vector.load %arg3[%c0_6, %c0_7] : memref<2x8xf32, #tpu.memory_space<vmem>>, vector<1x8xf32>
    %c1 = arith.constant 1 : index
    %c0_8 = arith.constant 0 : index
    %6 = vector.load %arg3[%c1, %c0_8] : memref<2x8xf32, #tpu.memory_space<vmem>>, vector<1x8xf32>
    %c0_9 = arith.constant 0 : index
    %c0_10 = arith.constant 0 : index
    %7 = vector.load %arg6[%c0_9, %c0_10] : memref<1x32xf32, #tpu.memory_space<vmem>>, vector<1x24xf32>
    %c0_11 = arith.constant 0 : index
    %c24_12 = arith.constant 24 : index
    %8 = vector.load %arg6[%c0_11, %c24_12] : memref<1x32xf32, #tpu.memory_space<vmem>>, vector<1x8xf32>
    %c0_13 = arith.constant 0 : index
    %c0_14 = arith.constant 0 : index
    %9 = vector.load %arg4[%c0_13, %c0_14] : memref<8x8xf32, #tpu.memory_space<vmem>>, vector<8x8xf32>
    %c0_i32 = arith.constant 0 : i32
    %10 = arith.index_cast %c0_i32 : i32 to index
    %c0_15 = arith.constant 0 : index
    %c0_16 = arith.constant 0 : index
    %11 = tpu.strided_load %arg1[%10, %c0_15, %c0_16] {strides = array<i32: 1, 2, 1>} : memref<1x18x4xf32, #tpu.memory_space<vmem>>, vector<1x8x4xf32>
    %12 = vector.shape_cast %11 : vector<1x8x4xf32> to vector<8x4xf32>
    %13 = arith.index_cast %c0_i32 : i32 to index
    %c1_17 = arith.constant 1 : index
    %c0_18 = arith.constant 0 : index
    %14 = tpu.strided_load %arg1[%13, %c1_17, %c0_18] {strides = array<i32: 1, 2, 1>} : memref<1x18x4xf32, #tpu.memory_space<vmem>>, vector<1x8x4xf32>
    %15 = vector.shape_cast %14 : vector<1x8x4xf32> to vector<8x4xf32>
    %16 = arith.index_cast %c0_i32 : i32 to index
    %c2 = arith.constant 2 : index
    %c0_19 = arith.constant 0 : index
    %17 = tpu.strided_load %arg1[%16, %c2, %c0_19] {strides = array<i32: 1, 2, 1>} : memref<1x18x4xf32, #tpu.memory_space<vmem>>, vector<1x8x4xf32>
    %18 = vector.shape_cast %17 : vector<1x8x4xf32> to vector<8x4xf32>
    %19 = tpu.concatenate %12, %15, %18 in 1 : vector<8x4xf32>, vector<8x4xf32>, vector<8x4xf32> -> vector<8x12xf32>
    %20 = arith.truncf %19 : vector<8x12xf32> to vector<8x12xbf16>
    %cst = arith.constant dense<0.000000e+00> : vector<8x8xf32>
    %21 = tpu.matmul %20, %0, %cst {dimension_numbers = #tpu.dot_dimension_numbers<[1], [0], [0], [1], [0, 0, 1, 1], [], []>} : vector<8x12xbf16>, vector<12x8xbf16>, vector<8x8xf32> -> vector<8x8xf32>
    %22 = vector.broadcast %5 : vector<1x8xf32> to vector<8x8xf32>
    %23 = arith.addf %21, %22 : vector<8x8xf32>
    %cst_20 = arith.constant 0.000000e+00 : f32
    %24 = vector.broadcast %cst_20 : f32 to vector<8x8xf32>
    %25 = arith.maximumf %23, %24 : vector<8x8xf32>
    %cst_21 = arith.constant 0.000000e+00 : f32
    %26 = vector.broadcast %cst_21 : f32 to vector<1x8xf32>
    %27 = vector.extract_strided_slice %25 {offsets = [0, 0], sizes = [7, 8], strides = [1, 1]} : vector<8x8xf32> to vector<7x8xf32>
    %28 = tpu.concatenate %26, %27 in 0 : vector<1x8xf32>, vector<7x8xf32> -> vector<8x8xf32>
    %29 = vector.extract_strided_slice %25 {offsets = [1, 0], sizes = [7, 8], strides = [1, 1]} : vector<8x8xf32> to vector<7x8xf32>
    %30 = tpu.concatenate %29, %26 in 0 : vector<7x8xf32>, vector<1x8xf32> -> vector<8x8xf32>
    %31 = tpu.concatenate %28, %25, %30 in 1 : vector<8x8xf32>, vector<8x8xf32>, vector<8x8xf32> -> vector<8x24xf32>
    %32 = arith.truncf %31 : vector<8x24xf32> to vector<8x24xbf16>
    %cst_22 = arith.constant dense<0.000000e+00> : vector<8x8xf32>
    %33 = tpu.matmul %32, %2, %cst_22 {dimension_numbers = #tpu.dot_dimension_numbers<[1], [0], [0], [1], [0, 0, 1, 1], [], []>} : vector<8x24xbf16>, vector<24x8xbf16>, vector<8x8xf32> -> vector<8x8xf32>
    %34 = arith.truncf %15 : vector<8x4xf32> to vector<8x4xbf16>
    %cst_23 = arith.constant dense<0.000000e+00> : vector<8x8xf32>
    %35 = tpu.matmul %34, %1, %cst_23 {dimension_numbers = #tpu.dot_dimension_numbers<[1], [0], [0], [1], [0, 0, 1, 1], [], []>} : vector<8x4xbf16>, vector<4x8xbf16>, vector<8x8xf32> -> vector<8x8xf32>
    %36 = arith.addf %33, %35 : vector<8x8xf32>
    %37 = vector.broadcast %6 : vector<1x8xf32> to vector<8x8xf32>
    %38 = arith.addf %36, %37 : vector<8x8xf32>
    %cst_24 = arith.constant 0.000000e+00 : f32
    %39 = vector.broadcast %cst_24 : f32 to vector<8x8xf32>
    %40 = arith.maximumf %38, %39 : vector<8x8xf32>
    %41 = arith.addf %40, %9 : vector<8x8xf32>
    %42 = arith.truncf %41 : vector<8x8xf32> to vector<8x8xbf16>
    %cst_25 = arith.constant dense<0.000000e+00> : vector<8x24xf32>
    %43 = tpu.matmul %42, %3, %cst_25 {dimension_numbers = #tpu.dot_dimension_numbers<[1], [0], [0], [1], [0, 0, 1, 1], [], []>} : vector<8x8xbf16>, vector<8x24xbf16>, vector<8x24xf32> -> vector<8x24xf32>
    %44 = vector.broadcast %7 : vector<1x24xf32> to vector<8x24xf32>
    %45 = arith.addf %43, %44 : vector<8x24xf32>
    %46 = vector.extract_strided_slice %45 {offsets = [0, 0], sizes = [8, 8], strides = [1, 1]} : vector<8x24xf32> to vector<8x8xf32>
    %47 = vector.extract_strided_slice %45 {offsets = [0, 8], sizes = [8, 8], strides = [1, 1]} : vector<8x24xf32> to vector<8x8xf32>
    %48 = vector.extract_strided_slice %45 {offsets = [0, 16], sizes = [8, 8], strides = [1, 1]} : vector<8x24xf32> to vector<8x8xf32>
    %49 = arith.truncf %46 : vector<8x8xf32> to vector<8x8xbf16>
    %50 = arith.truncf %47 : vector<8x8xf32> to vector<8x8xbf16>
    %cst_26 = arith.constant dense<0.000000e+00> : vector<8x8xf32>
    %51 = tpu.matmul %49, %50, %cst_26 {dimension_numbers = #tpu.dot_dimension_numbers<[1], [1], [0], [0], [0, 0, 1, 0], [], []>} : vector<8x8xbf16>, vector<8x8xbf16>, vector<8x8xf32> -> vector<8x8xf32>
    %cst_27 = arith.constant dense<0xFF800000> : vector<8xf32>
    %52 = vector.multi_reduction <maximumf>, %51, %cst_27 [1] : vector<8x8xf32> to vector<8xf32>
    %53 = vector.shape_cast %52 : vector<8xf32> to vector<8x1xf32>
    %54 = vector.broadcast %53 : vector<8x1xf32> to vector<8x8xf32>
    %55 = arith.subf %51, %54 : vector<8x8xf32>
    %56 = math.exp %55 : vector<8x8xf32>
    %cst_28 = arith.constant dense<0.000000e+00> : vector<8xf32>
    %57 = vector.multi_reduction <add>, %56, %cst_28 [1] : vector<8x8xf32> to vector<8xf32>
    %58 = vector.shape_cast %57 : vector<8xf32> to vector<8x1xf32>
    %59 = tpu.reciprocal %58 {approx = true} : vector<8x1xf32> -> vector<8x1xf32>
    %60 = vector.broadcast %59 : vector<8x1xf32> to vector<8x8xf32>
    %61 = arith.mulf %56, %60 : vector<8x8xf32>
    %62 = arith.truncf %48 : vector<8x8xf32> to vector<8x8xbf16>
    %63 = arith.truncf %61 : vector<8x8xf32> to vector<8x8xbf16>
    %cst_29 = arith.constant dense<0.000000e+00> : vector<8x8xf32>
    %64 = tpu.matmul %63, %62, %cst_29 {dimension_numbers = #tpu.dot_dimension_numbers<[1], [0], [0], [1], [0, 0, 1, 1], [], []>} : vector<8x8xbf16>, vector<8x8xbf16>, vector<8x8xf32> -> vector<8x8xf32>
    %65 = arith.truncf %64 : vector<8x8xf32> to vector<8x8xbf16>
    %cst_30 = arith.constant dense<0.000000e+00> : vector<8x8xf32>
    %66 = tpu.matmul %65, %4, %cst_30 {dimension_numbers = #tpu.dot_dimension_numbers<[1], [0], [0], [1], [0, 0, 1, 1], [], []>} : vector<8x8xbf16>, vector<8x8xbf16>, vector<8x8xf32> -> vector<8x8xf32>
    %67 = vector.broadcast %8 : vector<1x8xf32> to vector<8x8xf32>
    %68 = arith.addf %66, %67 : vector<8x8xf32>
    %69 = arith.index_cast %c0_i32 : i32 to index
    %c0_31 = arith.constant 0 : index
    %c0_32 = arith.constant 0 : index
    %70 = vector.load %arg7[%69, %c0_31, %c0_32] : memref<1x8x8xf32, #tpu.memory_space<vmem>>, vector<1x8x8xf32>
    %71 = vector.shape_cast %70 : vector<1x8x8xf32> to vector<8x8xf32>
    %72 = vector.shape_cast %68 : vector<8x8xf32> to vector<1x8x8xf32>
    tpu.vector_store %arg7[%69, %c0_31, %c0_32], %72 {strides = array<i32>} : memref<1x8x8xf32, #tpu.memory_space<vmem>>, vector<1x8x8xf32>,
    %c1_i32 = arith.constant 1 : i32
    return
  }
  func.func @transform_0(%arg0: i32) -> (i32, i32, i32) {
    %c0_i32 = arith.constant 0 : i32
    %c0_i32_0 = arith.constant 0 : i32
    %c0_i32_1 = arith.constant 0 : i32
    return %arg0, %c0_i32, %c0_i32_0 : i32, i32, i32
  }
  func.func @transform_1(%arg0: i32) -> (i32, i32) {
    %c0_i32 = arith.constant 0 : i32
    %c0_i32_0 = arith.constant 0 : i32
    %c0_i32_1 = arith.constant 0 : i32
    return %c0_i32, %c0_i32_0 : i32, i32
  }
  func.func @transform_2(%arg0: i32) -> (i32, i32) {
    %c0_i32 = arith.constant 0 : i32
    %c0_i32_0 = arith.constant 0 : i32
    %c0_i32_1 = arith.constant 0 : i32
    return %c0_i32, %c0_i32_0 : i32, i32
  }
  func.func @transform_3(%arg0: i32) -> (i32, i32) {
    %c0_i32 = arith.constant 0 : i32
    %c0_i32_0 = arith.constant 0 : i32
    %c0_i32_1 = arith.constant 0 : i32
    return %c0_i32, %c0_i32_0 : i32, i32
  }
  func.func @transform_4(%arg0: i32) -> (i32, i32) {
    %c0_i32 = arith.constant 0 : i32
    %c0_i32_0 = arith.constant 0 : i32
    %c0_i32_1 = arith.constant 0 : i32
    return %c0_i32, %c0_i32_0 : i32, i32
  }
  func.func @transform_5(%arg0: i32) -> (i32, i32) {
    %c0_i32 = arith.constant 0 : i32
    %c0_i32_0 = arith.constant 0 : i32
    %c0_i32_1 = arith.constant 0 : i32
    return %c0_i32, %c0_i32_0 : i32, i32
  }
  func.func @transform_6(%arg0: i32) -> (i32, i32, i32) {
    %c0_i32 = arith.constant 0 : i32
    %c0_i32_0 = arith.constant 0 : i32
    %c0_i32_1 = arith.constant 0 : i32
    return %arg0, %c0_i32, %c0_i32_0 : i32, i32, i32
  }
}

</mosaic_0001>

<bundles_post_ra>
// kernel: lgblock.1
= control target key start
LH: loop header
LB: loop body
LE: loop exit
PB: predicated region body
PF: predicated region fallthrough
CT: control target
= control target key end

     0   :  { %s908_s21 = smov 0   ;;  %s996_s0 = inlined_call_operand.vmem [shape: f32[2,18,4], index: 0, kind: input, shape index: {}]   ;;  %s997_s1 = inlined_call_operand.vmem [shape: bf16[40,8], index: 1, kind: input, shape index: {}]   ;;  %s998_s2 = inlined_call_operand.vmem [shape: f32[2,8], index: 2, kind: input, shape index: {}]   ;;  %s999_s3 = inlined_call_operand.vmem [shape: f32[8,8], index: 3, kind: input, shape index: {}]   ;;  %s1000_s4 = inlined_call_operand.vmem [shape: bf16[8,32], index: 4, kind: input, shape index: {}]   ;;  %s1001_s5 = inlined_call_operand.vmem [shape: f32[1,32], index: 5, kind: input, shape index: {}]   ;;  %s1002_s6 = inlined_call_operand.vmem [shape: f32[2,8,8], index: 6, kind: output, shape index: {}]  }
   0x1 LB: > { %s746_s22 = sadd.s32 4294967295, %s863_s21   ;;  %p750_p0 = scmp.ge.s32.totalorder %s863_s21, 1  ;;  %s863_s21 = sphi %s908_s21, %s16_s21  }
   0x2   : > { %p212_p1 = scmp.lt.s32.totalorder %s863_s21, 3 }
   0x4   : > { %p213_p2 = pnand %p750_p0, %p212_p1 }
   0x5   : > { %p241_p3 = scmp.lt.s32.totalorder (!%p213_p2), %s746_s22, 1  ;;  %v865_v0 = vmov (!%p213_p2), 0.0   ;;  %vm293_vm0 = vcmask (!%p213_p2), 1045504   ;;  %v848_v1 = vld [vmem:[%s997_s1] sm:$0x3f] (!%p213_p2)   ;;  %vm866_vm1 = vmmov (!%p213_p2), 0  }
   0x6   : > { %216 = sbr.rel (%p213_p2) target bundleno = 1996 (0x7cc), region = 44  ;;  %787 = vmatprep.subr.bf16.mxu0 (!%p213_p2), %v865_v0  ;;  %793 = vmatprep.subr.bf16.mxu1 (!%p213_p2), %v865_v0  ;;  %v295_v2 = vsel (!%p213_p2), %vm293_vm0, %v848_v1, 0  ;;  %s867_s29 = smov (!%p213_p2), 4   ;;  %vm275_vm2 = vcmask (!%p213_p2), 31744   ;;  %vm277_vm3 = vcmask (!%p213_p2), 64512   ;;  %vm289_vm4 = vcmask (!%p213_p2), 97280  }
   0x7   : > { %789 = vmatprep.mubr.msk.bf16.mxu0 (!%p213_p2), %vm866_vm1, %v865_v0  ;;  %795 = vmatprep.mubr.msk.bf16.mxu1 (!%p213_p2), %vm866_vm1, %v865_v0  ;;  %s868_s30 = smov (!%p213_p2), 8   ;;  %v850_v11 = vld [vmem:[%s997_s1 + $0x4] ss:$0 sps:$4 sm:$0xcc] (!%p213_p2)   ;;  %v849_v12 = vld [vmem:[%s997_s1 + $0x8] sm:$0xff] (!%p213_p2)   ;;  %vm366_vm5 = vcmask (!%p213_p2), 1041408  }
   0x8   : > { %788 = vmatpush3.bf16.msra.mxu0 (!%p213_p2), %v295_v2  ;;  %v362_v13 = vrot.slane (!%p213_p2), %v850_v11, 2  ;;  %v851_v16 = vld [vmem:[%s997_s1 + $0x10] ss:$0 sps:$4 sm:$0xff] (!%p213_p2)   ;;  %vm423_vm6 = vcmask (!%p213_p2), 1043456   ;;  %v755_v18 = vld [vmem:[%s998_s2] ss:$0 sm:$0xff] (!%p213_p2) }
   0x9   : > { %799 = vmatprep.subr.bf16.mxu0 (!%p213_p2), %v865_v0  ;;  %v425_v17 = vsel (!%p213_p2), %vm423_vm6, %v851_v16, 0  ;;  %vm345_vm7 = vcmask (!%p213_p2), 1046528   ;;  %s869_s15 = smov (!%p213_p2), 16   ;;  %vm341_vm8 = vcmask (!%p213_p2), 1040384   ;;  %vm355_vm9 = vcmask (!%p213_p2), 130048   ;;  %v261_v47 = vld [vmem:[%s999_s3] sm:$0xff] (!%p213_p2) }
   0xa   : > { %v368_v15 = vsel (!%p213_p2), %vm366_vm5, %v362_v13, 0  ;;  %vm419_vm10 = vcmask (!%p213_p2), 195584   ;;  %v257_v38 = vld [vmem:[%s1000_s4] sm:$0xf] (!%p213_p2)  ;;  %s870_s26 = smov (!%p213_p2), 120   ;;  %s871_s27 = smov (!%p213_p2), 112  }
   0xb   : > { %794 = vmatpush3.bf16.msra.mxu1 (!%p213_p2), %v368_v15  ;;  %v485_v39 = vsel (!%p213_p2), %vm423_vm6, %v257_v38, 0  ;;  %v763_v40 = vld [vmem:[%s998_s2 + $0x1] ss:$0 sm:$0xff] (!%p213_p2)  ;;  %v764_v51 = vld [vmem:[%s1001_s5] ss:$0 sm:$0xff] (!%p213_p2) }
   0xc   : > { %807 = vmatprep.subr.bf16.mxu1 (!%p213_p2), %v865_v0 }
   0xd   : > { %s1004_s22 = smov (!%p241_p3, %s746_s22), 1 }
   0xe   : > { %s831_s25 = smul.u32 24, %s1004_s22 }
  0x10   : > { %s245_s28 = scalar_lea.vmem %s996_s0, %s831_s25 }
  0x11   : > { %v753_v3 = vld [vmem:[%s245_s28 + $0x1] ss:$2 sm:$0xff]  ;;  %v754_v4 = vld [vmem:[%s245_s28 + $0x2] ss:$2 sm:$0xff] }
  0x12   : > { %268 = vrot.lane.b32.xlu0 %v753_v3, %s867_s29  ;;  %v262_v6 = vld [vmem:[%s245_s28] ss:$2 sm:$0xff]  ;;  %v358_v14 = vpack.c.bf16 %v753_v3, %v753_v3  ;;  %s872_s28 = smov 104   ;;  %s752_s29 = sshll.u32 %s1004_s22, 3 }
  0x13   : > { %s249_s8 = scalar_lea.vmem %s1002_s6, %s752_s29 }
  0x14   : > { %796 = vmatmul.mubr.msk.bf16.vlgmr.msra.gmra.mrb[0].mxu1 %vm275_vm2, %v358_v14 }
  0x15   : > { %809 = vmatprep.mubr.msk.bf16.mxu1 %vm866_vm1, %v865_v0  ;;  %808 = vmatpush3.bf16.msra.mxu1 %v485_v39 }
  0x16   : > { %272 = vrot.lane.b32.xlu0 %v754_v4, %s868_s30  ;;  %819 = vmatprep.subr.bf16.mxu1 %v865_v0 }
  0x84   : > { %v269_v5 = vpop.permute.xlu0 %268 }
  0x85   : > { %v276_v7 = vsel %vm275_vm2, %v262_v6, %v269_v5 }
  0x88   : > { %v273_v8 = vpop.permute.xlu0 %272 }
  0x89   : > { %v278_v9 = vsel %vm277_vm3, %v276_v7, %v273_v8  ;;  %v768_v7 = vcombine.low %v257_v38, %v257_v38 }
  0x8a   : > { %v279_v10 = vpack.c.bf16 %v278_v9, %v278_v9 }
  0x8c   : > { %790 = vmatmul.mubr.msk.bf16.vlgmr.msra.gmra.mrb[0].mxu0 %vm289_vm4, %v279_v10 }
  0x8d   : > { %803 = vmatprep.mubr.msk.bf16.mxu0 %vm866_vm1, %v865_v0  ;;  %800 = vmatpush3.bf16.msra.mxu0 %v849_v12 }
  0x8e   : > { %801 = vmatprep.subr.bf16.mxu0 %v865_v0 }
  0x91   : > { %802 = vmatpush3.bf16.msra.mxu0 %v425_v17 }
  0x92   : > { %813 = vmatprep.subr.bf16.mxu0 %v865_v0 }
  0xe7   : > { %v404_v34 = vpop.f32.mrb[0].mxu1 }
  0xe8   : > { %v797_v35 = vpop.f32.mrb[1].mxu1 }
  0xe9   : > { %v407_v36 = vpop.f32.mrb[2].mxu1 }
  0xea   : > { %v798_v37 = vpop.f32.mrb[3].mxu1 }
 0x15f   : > { %v331_v19 = vpop.f32.mrb[0].mxu0 }
 0x160   : > { %v332_v20 = vadd.f32 %v755_v18, %v331_v19  ;;  %v791_v21 = vpop.f32.mrb[1].mxu0 }
 0x161   : > { %v334_v22 = vpop.f32.mrb[2].mxu0 }
 0x162   : > { %v337_v23 = vmax.f32 %v332_v20, 0.0  ;;  %v792_v24 = vpop.f32.mrb[3].mxu0 }
 0x164   : > { %347 = vrot.lane.b32.xlu1 %v337_v23, %s868_s30  ;;  %v343_v25 = vrot.slane %v337_v23, 1  ;;  %v339_v27 = vrot.slane %v337_v23, 7 }
 0x166   : > { %v346_v26 = vsel %vm345_vm7, %v343_v25, 0.0  ;;  %v342_v29 = vsel %vm341_vm8, 0.0, %v339_v27 }
 0x168   : > { %351 = vrot.lane.b32.xlu1 %v346_v26, %s869_s15 }
 0x1d6   : > { %v348_v28 = vpop.permute.xlu1 %347 }
 0x1d7   : > { %v354_v30 = vsel %vm277_vm3, %v342_v29, %v348_v28 }
 0x1da   : > { %v352_v31 = vpop.permute.xlu1 %351 }
 0x1db   : > { %v356_v32 = vsel %vm355_vm9, %v354_v30, %v352_v31 }
 0x1dc   : > { %v357_v33 = vpack.c.bf16 %v356_v32, %v356_v32 }
 0x1de   : > { %804 = vmatmul.mubr.msk.bf16.vlgmr.msra.gmra.mrb[4].mxu0 %vm419_vm10, %v357_v33 }
 0x1df   : > { %815 = vmatprep.mubr.msk.bf16.mxu0 %vm866_vm1, %v865_v0 }
 0x2b1   : > { %v461_v41 = vpop.f32.mrb[4].mxu0 }
 0x2b2   : > { %v462_v42 = vadd.f32 %v461_v41, %v404_v34  ;;  %v805_v43 = vpop.f32.mrb[5].mxu0 }
 0x2b3   : > { %v464_v44 = vpop.f32.mrb[6].mxu0 }
 0x2b4   : > { %v471_v45 = vadd.f32 %v763_v40, %v462_v42  ;;  %v806_v46 = vpop.f32.mrb[7].mxu0 }
 0x2b6   : > { %v472_v48 = vmax.f32 %v471_v45, 0.0 }
 0x2b8   : > { %v473_v49 = vadd.f32 %v472_v48, %v261_v47 }
 0x2ba   : > { %v474_v50 = vpack.c.bf16 %v473_v49, %v473_v49 }
 0x2bc   : > { %810 = vmatmul.mubr.msk.bf16.vlgmr.msra.gmra.mrb[4].mxu1 %vm277_vm3, %v474_v50 }
 0x2bd   : > { %821 = vmatprep.mubr.msk.bf16.mxu1 %vm866_vm1, %v865_v0 }
 0x38f   : > { %v521_v52 = vpop.f32.mrb[4].mxu1 }
 0x390   : > { %v522_v53 = vadd.f32 %v764_v51, %v521_v52  ;;  %v811_v54 = vpop.f32.mrb[5].mxu1 }
 0x391   : > { %v524_v55 = vpop.f32.mrb[6].mxu1 }
 0x392   : > { %v527_v56 = vpack.c.bf16 %v522_v53, %v522_v53  ;;  %v812_v57 = vpop.f32.mrb[7].mxu1 }
 0x394   : > { %529 = vrot.lane.b32.xlu0 %v527_v56, %s870_s26 }
 0x406   : > { %v530_v58 = vpop.permute.xlu0 %529 }
 0x407   : > { %v535_v59 = vsel %vm277_vm3, %v530_v58, 0 }
 0x408   : > { %814 = vmatpush3.bf16.xpose.msra.mxu0 %v535_v59 }
 0x409   : > { %825 = vmatprep.subr.bf16.mxu0 %v865_v0 }
 0x40f   : > { %816 = vmatmul.mubr.msk.bf16.vlgmr.msra.gmra.mrb[8].mxu0 %vm277_vm3, %v527_v56 }
 0x410   : > { %827 = vmatprep.mubr.msk.bf16.mxu0 %vm866_vm1, %v865_v0 }
 0x4e2   : > { %v571_v60 = vpop.f32.mrb[8].mxu0 }
 0x4e3   : > { %v817_v61 = vpop.f32.mrb[9].mxu0  ;;  %v577_v62 = vsel %vm277_vm3, %v571_v60, -inf }
 0x4e4   : > { %578 = vmax.xlane.f32.xlu1 %v577_v62  ;;  %v574_v63 = vpop.f32.mrb[10].mxu0 }
 0x4e5   : > { %v818_v1 = vpop.f32.mrb[11].mxu0 }
 0x4f5   : > { %641 = vrot.lane.b32.xlu1 %v768_v7, %s872_s28 }
 0x4f9   : > { %643 = vrot.lane.b32.xlu1 %v764_v51, %s872_s28 }
 0x571   : > { %v579_v2 = vpop.xlane.xlu1 %578 }
 0x572   : > { %v580_v3 = vsub.f32 %v571_v60, %v579_v2 }
 0x574   : > { %v581_v4 = vmul.f32 1.442695, %v580_v3 }
 0x575   : > { %v642_v9 = vpop.permute.xlu1 %641 }
 0x576   : > { %853 = vpow2.f32 %v581_v4  ;;  %v650_v11 = vsel %vm423_vm6, %v642_v9, 0 }
 0x577   : > { %826 = vmatpush3.bf16.msra.mxu0 %v650_v11 }
 0x579   : > { %v644_v20 = vpop.permute.xlu1 %643 }
 0x580   : > { %v854_v5 = vpop.eup %853 }
 0x581   : > { %v583_v6 = vsel %vm277_vm3, %v854_v5, 0.0 }
 0x582   : > { %584 = vadd.xlane.f32.xlu0 %v583_v6 }
 0x598   : > { %589 = vrot.lane.b32.xlu0 %v527_v56, %s871_s27 }
 0x60f   : > { %v585_v0 = vpop.xlane.xlu0 %584 }
 0x610   : > { %855 = vrcp.f32 %v585_v0 }
 0x613   : > { %v590_v8 = vpop.permute.xlu0 %589 }
 0x614   : > { %v595_v10 = vsel %vm423_vm6, %v590_v8, 0 }
 0x615   : > { %820 = vmatpush3.bf16.msra.mxu1 %v595_v10 }
 0x61a   : > { %v856_v12 = vpop.eup %855 }
 0x61b   : > { %v587_v13 = vmul.f32 %v856_v12, %v854_v5 }
 0x61d   : > { %v588_v14 = vpack.c.bf16 %v587_v13, %v587_v13 }
 0x61f   : > { %822 = vmatmul.mubr.msk.bf16.vlgmr.msra.gmra.mrb[8].mxu1 %vm277_vm3, %v588_v14 }
 0x6f2   : > { %v631_v15 = vpop.f32.mrb[8].mxu1 }
 0x6f3   : > { %v637_v16 = vpack.c.bf16 %v631_v15, %v631_v15  ;;  %v823_v17 = vpop.f32.mrb[9].mxu1 }
 0x6f4   : > { %v634_v18 = vpop.f32.mrb[10].mxu1 }
 0x6f5   : > { %v824_v19 = vpop.f32.mrb[11].mxu1  ;;  %828 = vmatmul.mubr.msk.bf16.vlgmr.msra.gmra.mrb[12].mxu0 %vm277_vm3, %v637_v16 }
 0x7c8   : > { %v686_v21 = vpop.f32.mrb[12].mxu0 }
 0x7c9   : > { %v687_v22 = vadd.f32 %v686_v21, %v644_v20  ;;  %v829_v23 = vpop.f32.mrb[13].mxu0 }
 0x7ca   : > { %v689_v24 = vpop.f32.mrb[14].mxu0 }
 0x7cb   : > { %692 = vst.msk [vmem:[%s249_s8] sm:$0xff] %vm277_vm3, %v687_v22  ;;  %v830_v25 = vpop.f32.mrb[15].mxu0 }
 0x7cc PF: > { %s16_s21 = sadd.s32 1, %s863_s21  }
 0x7cd   : > { %p13_p4 = scmp.ge.s32.totalorder %s16_s21, 4  }
 0x7cf   :  { %15 = sbr.rel (!%p13_p4) target bundleno = 1 (0x1), region = 76 }

</bundles_post_ra>
